<compile_context>
chip_gen: v7x
topology: tpu7x:2x2x1
jax: 0.10.0
libtpu: 0.0.40
codegen_flags: <defaults>
</compile_context>

<pallas_src>
import jax
import jax.numpy as jnp
from jax.experimental import pallas as pl
from jax.experimental.pallas import tpu as pltpu


LANES = 128
_TARGET_BLOCK_BYTES = 4 * 1024 * 1024   # ~4 MiB per block; in+out double-buffered ~= 16 MiB
_VMEM_LIMIT_BYTES = 40 * 1024 * 1024    # > v5e's 16 MiB default scoped VMEM, < v7x 64 MiB physical


def _shift_kernel(s_ref, x_ref, o_ref):
    # Single VPU subtract per vreg; purely HBM-bandwidth bound.
    o_ref[...] = x_ref[...] - s_ref[0, 0].astype(x_ref.dtype)


def _sublane(itemsize: int) -> int:
    # Packed sublanes per vreg: 8 (4-byte), 16 (2-byte), 32 (1-byte).
    return 8 * (4 // itemsize)


def _pick_block(extent: int, unit: int, target: int) -> int:
    """Block length: multiple of `unit`, <= `target`, and >= 2 grid steps
    whenever the extent allows it (v7x megacore needs >= 2 parallel steps)."""
    if extent <= unit:
        return extent                       # tiny input: single full-dim block
    half = pl.cdiv(pl.cdiv(extent, 2), unit) * unit
    return max(unit, min(target, half))


def _shift_fwd_impl(x, shift_scalar):
    orig_shape = x.shape
    dtype = x.dtype
    n = x.size
    itemsize = jnp.dtype(dtype).itemsize
    sub = _sublane(itemsize)

    compiler_params = pltpu.CompilerParams(
        dimension_semantics=("parallel",),
        vmem_limit_bytes=_VMEM_LIMIT_BYTES,
    )
    smem_spec = pl.BlockSpec(memory_space=pltpu.MemorySpace.SMEM)

    x_flat = x.reshape(-1)

    if n % LANES == 0:
        # Lane-dense 2-D slab [rows, width]; widest of 1024/512/256/128 dividing n.
        width = LANES
        for w in (1024, 512, 256):
            if n % w == 0:
                width = w
                break
        rows = n // width
        x2d = x_flat.reshape(rows, width)

        target_rows = max(sub, (_TARGET_BLOCK_BYTES // (width * itemsize)) // sub * sub)
        block_rows = _pick_block(rows, sub, target_rows)
        grid = (pl.cdiv(rows, block_rows),)

        out = pl.pallas_call(
            _shift_kernel,
            out_shape=jax.ShapeDtypeStruct((rows, width), dtype),
            grid=grid,
            in_specs=[
                smem_spec,
                pl.BlockSpec((block_rows, width), lambda i: (i, 0)),
            ],
            out_specs=pl.BlockSpec((block_rows, width), lambda i: (i, 0)),
            compiler_params=compiler_params,
        )(shift_scalar, x2d)
    else:
        # Ragged size: flat 1-D layout, no pad/concat/slice. Pallas masks the
        # partial last block (or uses one full-dim block when n < chunk).
        chunk = sub * LANES
        target_elems = max(chunk, (_TARGET_BLOCK_BYTES // itemsize) // chunk * chunk)
        block = _pick_block(n, chunk, target_elems)
        grid = (pl.cdiv(n, block),)

        out = pl.pallas_call(
            _shift_kernel,
            out_shape=jax.ShapeDtypeStruct((n,), dtype),
            grid=grid,
            in_specs=[
                smem_spec,
                pl.BlockSpec((block,), lambda i: (i,)),
            ],
            out_specs=pl.BlockSpec((block,), lambda i: (i,)),
            compiler_params=compiler_params,
        )(shift_scalar, x_flat)

    return out.reshape(orig_shape)


_shift_fwd_jit = jax.jit(_shift_fwd_impl)


def shift_forward(x: jax.Array, shift) -> jax.Array:
    """Pallas implementation of Shift.forward: x - shift."""
    # Promote like PyTorch (e.g. int tensor - float scalar -> float tensor).
    out_dtype = jnp.result_type(x.dtype, shift)
    if x.dtype != out_dtype:
        x = x.astype(out_dtype)
    if x.size == 0:
        return x

    # SMEM holds 32-bit scalars; narrower output dtypes cast the scalar in-kernel.
    if jnp.issubdtype(out_dtype, jnp.integer):
        s_dtype = jnp.int32
    elif jnp.dtype(out_dtype).itemsize < 4:
        s_dtype = jnp.float32
    else:
        s_dtype = out_dtype
    shift_scalar = jnp.full((1, 1), shift, dtype=s_dtype)

    return _shift_fwd_jit(x, shift_scalar)


if __name__ == "__main__":
    key = jax.random.PRNGKey(0)
    k1, k2 = jax.random.split(key)
    shift = 0.5  # deterministic "parameter" from __init__(shift)

    # Primary case: small NCHW-like input, size a multiple of 128 (2-D path).
    x = jax.random.normal(k1, (2, 4, 16, 16), dtype=jnp.float32)
    out = jax.block_until_ready(shift_forward(x, shift))
    ref = x - shift
    assert out.shape == x.shape and out.dtype == ref.dtype
    assert jnp.max(jnp.abs(out - ref)) < 1e-6

    # Ragged case: size (105) not a multiple of 128 exercises the pad-free 1-D path.
    x2 = jax.random.normal(k2, (3, 7, 5), dtype=jnp.float32)
    out2 = jax.block_until_ready(shift_forward(x2, shift))
    ref2 = x2 - shift
    assert out2.shape == x2.shape and out2.dtype == ref2.dtype
    assert jnp.max(jnp.abs(out2 - ref2)) < 1e-6

    print("KERNEL_OK")
</pallas_src>

<mosaic_0001>
module attributes {stable_mosaic.version = 11 : i64} {
  func.func @_shift_kernel(%arg0: i32, %arg1: memref<1x1xf32, #tpu.memory_space<smem>>, %arg2: memref<2x1024xf32, #tpu.memory_space<vmem>>, %arg3: memref<2x1024xf32, #tpu.memory_space<vmem>>) attributes {dimension_semantics = [#tpu.dimension_semantics<parallel>], iteration_bounds = array<i64: 1>, scalar_prefetch = 0 : i64, scratch_operands = 0 : i64, tpu.core_type = #tpu.core_type<tc>, window_params = [{transform_indices = @transform_0, window_bounds = array<i64: 1, 1>}, {transform_indices = @transform_1, window_bounds = array<i64: 2, 1024>}, {transform_indices = @transform_2, window_bounds = array<i64: 2, 1024>}]} {
    %c0 = arith.constant 0 : index
    %c0_0 = arith.constant 0 : index
    %0 = vector.load %arg2[%c0, %c0_0] : memref<2x1024xf32, #tpu.memory_space<vmem>>, vector<2x1024xf32>
    %c0_1 = arith.constant 0 : index
    %c0_2 = arith.constant 0 : index
    %1 = memref.load %arg1[%c0_1, %c0_2] : memref<1x1xf32, #tpu.memory_space<smem>>
    %2 = vector.broadcast %1 : f32 to vector<2x1024xf32>
    %3 = arith.subf %0, %2 : vector<2x1024xf32>
    %c0_3 = arith.constant 0 : index
    %c0_4 = arith.constant 0 : index
    %4 = vector.load %arg3[%c0_3, %c0_4] : memref<2x1024xf32, #tpu.memory_space<vmem>>, vector<2x1024xf32>
    tpu.vector_store %arg3[%c0_3, %c0_4], %3 {strides = array<i32>} : memref<2x1024xf32, #tpu.memory_space<vmem>>, vector<2x1024xf32>,
    return
  }
  func.func @transform_0(%arg0: i32) -> (i32, i32) {
    %c0_i32 = arith.constant 0 : i32
    %c0_i32_0 = arith.constant 0 : i32
    %c0_i32_1 = arith.constant 0 : i32
    return %c0_i32, %c0_i32_0 : i32, i32
  }
  func.func @transform_1(%arg0: i32) -> (i32, i32) {
    %c0_i32 = arith.constant 0 : i32
    %c0_i32_0 = arith.constant 0 : i32
    return %arg0, %c0_i32 : i32, i32
  }
  func.func @transform_2(%arg0: i32) -> (i32, i32) {
    %c0_i32 = arith.constant 0 : i32
    %c0_i32_0 = arith.constant 0 : i32
    return %arg0, %c0_i32 : i32, i32
  }
}

</mosaic_0001>

<bundles_post_ra>
// kernel: _shift_fwd_impl.1
= control target key start
LH: loop header
LB: loop body
LE: loop exit
PB: predicated region body
PF: predicated region fallthrough
CT: control target
= control target key end

     0   :  { %s54_s0 = inlined_call_operand.<no memory space> [shape: f32[1,1], index: 0, kind: input, shape index: {}]   ;;  %s55_s1 = inlined_call_operand.vmem [shape: f32[2,1024], index: 1, kind: input, shape index: {}]   ;;  %s56_s2 = inlined_call_operand.vmem [shape: f32[2,1024], index: 2, kind: output, shape index: {}]  }
   0x1   :  { %v12_v0 = vld [vmem:[%s55_s1] sm:$0xff]  ;;  %v15_v1 = vstv %s54_s0  ;;  %v13_v2 = vld [vmem:[%s55_s1 + $0x8] sm:$0xff] }
   0x2   :  { %v16_v3 = vsub.f32 %v12_v0, %v15_v1  ;;  %v17_v4 = vsub.f32 %v13_v2, %v15_v1 }
   0x4   :  { %18 = vst [vmem:[%s56_s2] sm:$0xff] %v16_v3  ;;  %19 = vst [vmem:[%s56_s2 + $0x8] sm:$0xff] %v17_v4 }

</bundles_post_ra>
